<compile_context>
chip_gen: v6e
topology: v6e:2x2x1
jax: 0.10.0
libtpu: 0.0.40
codegen_flags: <defaults>
</compile_context>

<pallas_src>
import functools

import jax
import jax.numpy as jnp
from jax.experimental import pallas as pl
from jax.experimental.pallas import tpu as pltpu

_LANE = 128      # lane width (last dim alignment)
_SUBLANE = 8     # sublane width (second-to-last dim alignment)


def _round_up(n: int, m: int) -> int:
    return ((n + m - 1) // m) * m


def _mlp_kernel(*refs, n_layers: int, d_out_valid: int):
    """Fused MLP kernel.

    refs = (x_ref, w1_ref, b1_ref, ..., wn_ref, bn_ref, o_ref)
      x_ref: (tm, d_in)  w_i: (K_pad_i, Dout_pad_i)  b_i: (1, Dout_pad_i)
      o_ref: (tm, Dout_pad_last)
    Layers 0..n-2: Linear + ReLU.  Last layer: Linear + Softmax over valid lanes.
    Padded lanes carry zeros and never contaminate valid outputs.
    """
    x_ref = refs[0]
    o_ref = refs[-1]
    wb = refs[1:-1]

    h = x_ref[...].astype(jnp.float32)
    for i in range(n_layers):
        w = wb[2 * i][...]
        b = wb[2 * i + 1][...]
        y = jnp.dot(h, w, preferred_element_type=jnp.float32) + b  # (tm, Dout_pad)
        if i < n_layers - 1:
            h = jnp.maximum(y, 0.0)
        else:
            # Numerically-stable softmax over dim=1, restricted to the valid lanes.
            if d_out_valid < y.shape[1]:
                lane = jax.lax.broadcasted_iota(jnp.int32, y.shape, 1)
                y = jnp.where(lane < d_out_valid, y, -jnp.inf)
            m = jnp.max(y, axis=1, keepdims=True)
            e = jnp.exp(y - m)                      # padded lanes -> exp(-inf) = 0
            denom = jnp.sum(e, axis=1, keepdims=True)
            h = e / denom                           # exact division (not EUP-bound)
    o_ref[...] = h.astype(o_ref.dtype)


def pad_params(params):
    """Pad weights/biases ONCE (call at init time, not inside the per-call path).

    Layer 0's K dim is left at d_in (x is passed unpadded); every layer's output
    dim is padded to a multiple of 128 with zeros, and the next layer's K dim is
    padded to match.  Returns (padded_params, d_out_valid).
    """
    assert len(params) >= 1, "ClassifierVariableLayers needs >= 1 Linear layer"
    padded = []
    prev_logical = params[0][0].shape[0]
    prev_pad = prev_logical                      # layer-0 K stays unpadded
    for (w, b) in params:
        di, do = w.shape
        assert di == prev_logical, "layer input dim must match previous output dim"
        do_p = _round_up(do, _LANE)
        w_p = jnp.zeros((prev_pad, do_p), jnp.float32).at[:di, :do].set(
            w.astype(jnp.float32))
        b_p = jnp.zeros((1, do_p), jnp.float32).at[:, :do].set(
            b.reshape(1, -1).astype(jnp.float32))
        padded.append((w_p, b_p))
        prev_logical, prev_pad = do, do_p
    return padded, params[-1][0].shape[1]


def _vmem_bytes_estimate(tm, d_in, padded_params, dout_pad):
    itemsize = 4
    total = 2 * tm * d_in * itemsize                 # x tile (double-buffered)
    total += 2 * tm * dout_pad * itemsize            # out tile (double-buffered)
    for (w, b) in padded_params:                     # resident weights (2 buffers)
        total += 2 * (w.size + b.size) * itemsize
    max_d = max(w.shape[1] for (w, _) in padded_params)
    total += 2 * tm * max_d * itemsize               # inter-layer activation headroom
    return total


def classifier_forward(x, padded_params, d_out):
    """Forward pass of ClassifierVariableLayers as a single fused Pallas kernel.

    x: (batch, d_in) float32 (passed to the kernel unpadded)
    padded_params: output of pad_params()
    Returns (batch, d_out) float32 with rows summing to 1 (softmax dim=1).
    """
    batch, d_in = x.shape
    n_layers = len(padded_params)
    assert n_layers >= 1
    assert d_in == padded_params[0][0].shape[0]
    dout_pad = padded_params[-1][0].shape[1]

    # Batch tile: multiple of 8 (or the full batch when batch < 8); aim for >= 2
    # grid steps when batch >= 16 so both v7x TensorCores get work.
    if batch <= _SUBLANE:
        tm = batch
    else:
        b8 = _round_up(batch, _SUBLANE)
        tm = min(1024, _round_up(pl.cdiv(b8, 2), _SUBLANE))

    # Keep everything VMEM-resident within a conservative cross-generation budget.
    budget = 48 << 20
    while (_vmem_bytes_estimate(tm, d_in, padded_params, dout_pad) > budget
           and tm > _SUBLANE):
        tm = max(_SUBLANE, _round_up(tm // 2, _SUBLANE))
    # TODO(synk): for multi-K hidden sizes that still exceed VMEM, fall back to a
    # K/N-gridded accumulator (pl.when init/finalize) instead of resident weights.
    vmem_limit = int(min(
        max(2 * _vmem_bytes_estimate(tm, d_in, padded_params, dout_pad), 32 << 20),
        64 << 20))

    grid = (pl.cdiv(batch, tm),)   # partial last block: reads padded, writes masked

    # x passed directly: last block dim == full array dim, so d_in need not be 128-aligned.
    in_specs = [pl.BlockSpec((tm, d_in), lambda i: (i, 0))]
    flat_wb = []
    for (w_p, b_p) in padded_params:
        # TODO(synk): pipeline_mode=pl.Buffered(1) would single-buffer these constant
        # blocks and halve resident-weight VMEM once broadly supported.
        in_specs.append(pl.BlockSpec(w_p.shape, lambda i: (0, 0)))
        in_specs.append(pl.BlockSpec(b_p.shape, lambda i: (0, 0)))
        flat_wb.extend([w_p, b_p])
    out_spec = pl.BlockSpec((tm, dout_pad), lambda i: (i, 0))

    kernel = functools.partial(_mlp_kernel, n_layers=n_layers, d_out_valid=d_out)

    out_padded = pl.pallas_call(
        kernel,
        out_shape=jax.ShapeDtypeStruct((batch, dout_pad), jnp.float32),
        grid=grid,
        in_specs=in_specs,
        out_specs=out_spec,
        compiler_params=pltpu.CompilerParams(
            dimension_semantics=("parallel",),
            vmem_limit_bytes=vmem_limit),
    )(x.astype(jnp.float32), *flat_wb)

    return out_padded[:, :d_out] if dout_pad != d_out else out_padded


def init_params(hidden_sizes, key):
    """Deterministic parameter init mirroring nn.Linear shapes:
    torch weight (out, in) -> stored transposed as (in, out); bias (out,).
    U(-1/sqrt(fan_in), 1/sqrt(fan_in)) like PyTorch's default."""
    params = []
    for i in range(len(hidden_sizes) - 1):
        din, dout = hidden_sizes[i], hidden_sizes[i + 1]
        key, kw, kb = jax.random.split(key, 3)
        bound = 1.0 / jnp.sqrt(jnp.float32(din))
        w = jax.random.uniform(kw, (din, dout), jnp.float32, -bound, bound)
        b = jax.random.uniform(kb, (dout,), jnp.float32, -bound, bound)
        params.append((w, b))
    return params


def _reference_forward(x, params):
    """Pure-JAX reference matching the PyTorch module."""
    n = len(params)
    h = x
    for i, (w, b) in enumerate(params):
        h = h @ w + b
        if i < n - 1:
            h = jnp.maximum(h, 0.0)
        else:
            h = jax.nn.softmax(h, axis=1)
    return h


if __name__ == "__main__":
    # hidden_sizes plays the role of ClassificationOptions.hidden_sizes
    hidden_sizes = [32, 64, 48, 10]  # 3 Linear layers: 2x (Linear+ReLU), 1x (Linear+Softmax)
    batch = 8

    key = jax.random.PRNGKey(0)
    key, kx = jax.random.split(key)
    x = jax.random.normal(kx, (batch, hidden_sizes[0]), dtype=jnp.float32)
    params = init_params(hidden_sizes, key)

    # Pad parameters ONCE (init-time), outside the per-call path.
    padded_params, d_out = pad_params(params)
    padded_params = jax.tree_util.tree_map(jax.block_until_ready, padded_params)

    fwd = jax.jit(lambda xx, pp: classifier_forward(xx, pp, d_out))
    out = jax.block_until_ready(fwd(x, padded_params))

    # sanity: shape, softmax rows sum to 1, matches pure-JAX reference
    assert out.shape == (batch, hidden_sizes[-1])
    row_sums = jnp.sum(out, axis=1)
    assert bool(jnp.allclose(row_sums, 1.0, atol=1e-4))
    ref = _reference_forward(x, params)
    assert bool(jnp.allclose(out, ref, atol=2e-5, rtol=2e-5))

    print("KERNEL_OK")
</pallas_src>

<mosaic_0001>
module attributes {stable_mosaic.version = 11 : i64} {
  func.func @_mlp_kernel(%arg0: i32, %arg1: memref<8x32xf32, #tpu.memory_space<vmem>>, %arg2: memref<32x128xf32, #tpu.memory_space<vmem>>, %arg3: memref<1x128xf32, #tpu.memory_space<vmem>>, %arg4: memref<128x128xf32, #tpu.memory_space<vmem>>, %arg5: memref<1x128xf32, #tpu.memory_space<vmem>>, %arg6: memref<128x128xf32, #tpu.memory_space<vmem>>, %arg7: memref<1x128xf32, #tpu.memory_space<vmem>>, %arg8: memref<8x128xf32, #tpu.memory_space<vmem>>) attributes {dimension_semantics = [#tpu.dimension_semantics<parallel>], iteration_bounds = array<i64: 1>, scalar_prefetch = 0 : i64, scratch_operands = 0 : i64, tpu.core_type = #tpu.core_type<tc>, window_params = [{transform_indices = @transform_0, window_bounds = array<i64: 8, 32>}, {pipeline_mode = #tpu.pipeline_mode<synchronous>, transform_indices = @transform_1, window_bounds = array<i64: 32, 128>}, {pipeline_mode = #tpu.pipeline_mode<synchronous>, transform_indices = @transform_2, window_bounds = array<i64: 1, 128>}, {pipeline_mode = #tpu.pipeline_mode<synchronous>, transform_indices = @transform_3, window_bounds = array<i64: 128, 128>}, {pipeline_mode = #tpu.pipeline_mode<synchronous>, transform_indices = @transform_4, window_bounds = array<i64: 1, 128>}, {pipeline_mode = #tpu.pipeline_mode<synchronous>, transform_indices = @transform_5, window_bounds = array<i64: 128, 128>}, {pipeline_mode = #tpu.pipeline_mode<synchronous>, transform_indices = @transform_6, window_bounds = array<i64: 1, 128>}, {transform_indices = @transform_7, window_bounds = array<i64: 8, 128>}]} {
    %c0 = arith.constant 0 : index
    %c0_0 = arith.constant 0 : index
    %0 = vector.load %arg1[%c0, %c0_0] : memref<8x32xf32, #tpu.memory_space<vmem>>, vector<8x32xf32>
    %c0_1 = arith.constant 0 : index
    %c0_2 = arith.constant 0 : index
    %1 = vector.load %arg2[%c0_1, %c0_2] : memref<32x128xf32, #tpu.memory_space<vmem>>, vector<32x128xf32>
    %c0_3 = arith.constant 0 : index
    %c0_4 = arith.constant 0 : index
    %2 = vector.load %arg3[%c0_3, %c0_4] : memref<1x128xf32, #tpu.memory_space<vmem>>, vector<1x128xf32>
    %cst = arith.constant dense<0.000000e+00> : vector<8x128xf32>
    %3 = tpu.matmul %0, %1, %cst {dimension_numbers = #tpu.dot_dimension_numbers<[1], [0], [0], [1], [0, 0, 1, 1], [], []>} : vector<8x32xf32>, vector<32x128xf32>, vector<8x128xf32> -> vector<8x128xf32>
    %4 = vector.broadcast %2 : vector<1x128xf32> to vector<8x128xf32>
    %5 = arith.addf %3, %4 : vector<8x128xf32>
    %cst_5 = arith.constant 0.000000e+00 : f32
    %6 = vector.broadcast %cst_5 : f32 to vector<8x128xf32>
    %7 = arith.maximumf %5, %6 : vector<8x128xf32>
    %c0_6 = arith.constant 0 : index
    %c0_7 = arith.constant 0 : index
    %8 = vector.load %arg4[%c0_6, %c0_7] : memref<128x128xf32, #tpu.memory_space<vmem>>, vector<128x128xf32>
    %c0_8 = arith.constant 0 : index
    %c0_9 = arith.constant 0 : index
    %9 = vector.load %arg5[%c0_8, %c0_9] : memref<1x128xf32, #tpu.memory_space<vmem>>, vector<1x128xf32>
    %cst_10 = arith.constant dense<0.000000e+00> : vector<8x128xf32>
    %10 = tpu.matmul %7, %8, %cst_10 {dimension_numbers = #tpu.dot_dimension_numbers<[1], [0], [0], [1], [0, 0, 1, 1], [], []>} : vector<8x128xf32>, vector<128x128xf32>, vector<8x128xf32> -> vector<8x128xf32>
    %11 = vector.broadcast %9 : vector<1x128xf32> to vector<8x128xf32>
    %12 = arith.addf %10, %11 : vector<8x128xf32>
    %cst_11 = arith.constant 0.000000e+00 : f32
    %13 = vector.broadcast %cst_11 : f32 to vector<8x128xf32>
    %14 = arith.maximumf %12, %13 : vector<8x128xf32>
    %c0_12 = arith.constant 0 : index
    %c0_13 = arith.constant 0 : index
    %15 = vector.load %arg6[%c0_12, %c0_13] : memref<128x128xf32, #tpu.memory_space<vmem>>, vector<128x128xf32>
    %c0_14 = arith.constant 0 : index
    %c0_15 = arith.constant 0 : index
    %16 = vector.load %arg7[%c0_14, %c0_15] : memref<1x128xf32, #tpu.memory_space<vmem>>, vector<1x128xf32>
    %cst_16 = arith.constant dense<0.000000e+00> : vector<8x128xf32>
    %17 = tpu.matmul %14, %15, %cst_16 {dimension_numbers = #tpu.dot_dimension_numbers<[1], [0], [0], [1], [0, 0, 1, 1], [], []>} : vector<8x128xf32>, vector<128x128xf32>, vector<8x128xf32> -> vector<8x128xf32>
    %18 = vector.broadcast %16 : vector<1x128xf32> to vector<8x128xf32>
    %19 = arith.addf %17, %18 : vector<8x128xf32>
    %20 = tpu.iota {dimensions = array<i32: 1>} : vector<8x128xi32>
    %c10_i32 = arith.constant 10 : i32
    %21 = vector.broadcast %c10_i32 : i32 to vector<8x128xi32>
    %22 = arith.cmpi slt, %20, %21 : vector<8x128xi32>
    %cst_17 = arith.constant 0xFF800000 : f32
    %23 = vector.broadcast %cst_17 : f32 to vector<8x128xf32>
    %24 = arith.select %22, %19, %23 : vector<8x128xi1>, vector<8x128xf32>
    %cst_18 = arith.constant dense<0xFF800000> : vector<8xf32>
    %25 = vector.multi_reduction <maximumf>, %24, %cst_18 [1] : vector<8x128xf32> to vector<8xf32>
    %26 = vector.shape_cast %25 : vector<8xf32> to vector<8x1xf32>
    %27 = vector.broadcast %26 : vector<8x1xf32> to vector<8x128xf32>
    %28 = arith.subf %24, %27 : vector<8x128xf32>
    %29 = math.exp %28 : vector<8x128xf32>
    %cst_19 = arith.constant dense<0.000000e+00> : vector<8xf32>
    %30 = vector.multi_reduction <add>, %29, %cst_19 [1] : vector<8x128xf32> to vector<8xf32>
    %31 = vector.shape_cast %30 : vector<8xf32> to vector<8x1xf32>
    %32 = vector.broadcast %31 : vector<8x1xf32> to vector<8x128xf32>
    %33 = arith.divf %29, %32 : vector<8x128xf32>
    %c0_20 = arith.constant 0 : index
    %c0_21 = arith.constant 0 : index
    %34 = vector.load %arg8[%c0_20, %c0_21] : memref<8x128xf32, #tpu.memory_space<vmem>>, vector<8x128xf32>
    tpu.vector_store %arg8[%c0_20, %c0_21], %33 {strides = array<i32>} : memref<8x128xf32, #tpu.memory_space<vmem>>, vector<8x128xf32>,
    return
  }
  func.func @transform_0(%arg0: i32) -> (i32, i32) {
    %c0_i32 = arith.constant 0 : i32
    %c0_i32_0 = arith.constant 0 : i32
    return %arg0, %c0_i32 : i32, i32
  }
  func.func @transform_1(%arg0: i32) -> (i32, i32) {
    %c0_i32 = arith.constant 0 : i32
    %c0_i32_0 = arith.constant 0 : i32
    %c0_i32_1 = arith.constant 0 : i32
    return %c0_i32, %c0_i32_0 : i32, i32
  }
  func.func @transform_2(%arg0: i32) -> (i32, i32) {
    %c0_i32 = arith.constant 0 : i32
    %c0_i32_0 = arith.constant 0 : i32
    %c0_i32_1 = arith.constant 0 : i32
    return %c0_i32, %c0_i32_0 : i32, i32
  }
  func.func @transform_3(%arg0: i32) -> (i32, i32) {
    %c0_i32 = arith.constant 0 : i32
    %c0_i32_0 = arith.constant 0 : i32
    %c0_i32_1 = arith.constant 0 : i32
    return %c0_i32, %c0_i32_0 : i32, i32
  }
  func.func @transform_4(%arg0: i32) -> (i32, i32) {
    %c0_i32 = arith.constant 0 : i32
    %c0_i32_0 = arith.constant 0 : i32
    %c0_i32_1 = arith.constant 0 : i32
    return %c0_i32, %c0_i32_0 : i32, i32
  }
  func.func @transform_5(%arg0: i32) -> (i32, i32) {
    %c0_i32 = arith.constant 0 : i32
    %c0_i32_0 = arith.constant 0 : i32
    %c0_i32_1 = arith.constant 0 : i32
    return %c0_i32, %c0_i32_0 : i32, i32
  }
  func.func @transform_6(%arg0: i32) -> (i32, i32) {
    %c0_i32 = arith.constant 0 : i32
    %c0_i32_0 = arith.constant 0 : i32
    %c0_i32_1 = arith.constant 0 : i32
    return %c0_i32, %c0_i32_0 : i32, i32
  }
  func.func @transform_7(%arg0: i32) -> (i32, i32) {
    %c0_i32 = arith.constant 0 : i32
    %c0_i32_0 = arith.constant 0 : i32
    return %arg0, %c0_i32 : i32, i32
  }
}

</mosaic_0001>

<bundles_post_ra>
// kernel: _lambda_.1
= control target key start
LH: loop header
LB: loop body
LE: loop exit
PB: predicated region body
PF: predicated region fallthrough
CT: control target
= control target key end

     0   :  { %12 = vsyncpa [#allocation3], 0  ;;  %s754_s0 = inlined_call_operand.hbm [shape: f32[8,32], index: 0, kind: input, shape index: {}]   ;;  %s755_s1 = inlined_call_operand.hbm [shape: f32[32,128], index: 1, kind: input, shape index: {}]   ;;  %s756_s2 = inlined_call_operand.vmem [shape: f32[1,128], index: 2, kind: input, shape index: {}]   ;;  %s757_s3 = inlined_call_operand.hbm [shape: f32[128,128], index: 3, kind: input, shape index: {}]   ;;  %s758_s4 = inlined_call_operand.vmem [shape: f32[1,128], index: 4, kind: input, shape index: {}]   ;;  %s759_s5 = inlined_call_operand.hbm [shape: f32[128,128], index: 5, kind: input, shape index: {}]   ;;  %s760_s6 = inlined_call_operand.vmem [shape: f32[1,128], index: 6, kind: input, shape index: {}]   ;;  %s761_s7 = inlined_call_operand.hbm [shape: f32[8,128], index: 7, kind: output, shape index: {}]  }
   0x1   :  { %13 = vsyncpa [#allocation6], 0 }
   0x2   :  { %14 = vsyncpa [#allocation9], 0 }
   0x3   :  { %15 = vsyncpa [#allocation4], 0  ;;  %s630_s24 = smov [#allocation5]  }
   0x4   :  { %s31_s25 = sshll.u32 %s630_s24, 4  ;;  %s32_s25 = int_to_ptr.vmem [resolvable:$true] %s31_s25 }
   0x5   :  { %s530_s26 = scalar_lea.vmem %s32_s25, 512  ;;  %p535_p1 = scmp.lt.s32.totalorder %s32_s25, %s32_s25 }
   0x6   :  { %p531_p0 = scmp.ne.s32.totalorder %s32_s25, %s530_s26  ;;  %p536_p2 = scmp.lt.s32.totalorder %s530_s26, %s530_s26 }
   0x8   :  { %p537_p3 = por %p536_p2, %p535_p1 }
   0xa   :  { %p538_p4 = pnand %p537_p3, %p531_p0 }
   0xc   :  { %541 = shalt.err (!%p538_p4)
}
   0xd   :  { %s631_s27 = smov 128   ;;  %s632_s28 = smov 8  }
   0xe   :  { %37 = dma.hbm_to_vmem [thread:$0]  %s755_s1, 512, %s32_s25, [#allocation6], %s631_s27, %s631_s27, %s632_s28  }
   0xf   :  { %s633_s8 = smov [#allocation2]   ;;  %s634_s10 = smov [#allocation7]  }
  0x10   :  { %s22_s9 = sshll.u32 %s633_s8, 4  ;;  %s45_s11 = sshll.u32 %s634_s10, 4  ;;  %s23_s9 = int_to_ptr.vmem [resolvable:$true] %s22_s9  ;;  %s46_s11 = int_to_ptr.vmem [resolvable:$true] %s45_s11 }
  0x11   :  { %s550_s12 = scalar_lea.vmem %s23_s9, 128  ;;  %p555_p6 = scmp.lt.s32.totalorder %s23_s9, %s23_s9 }
  0x12   :  { %p551_p5 = scmp.ne.s32.totalorder %s23_s9, %s550_s12  ;;  %p556_p7 = scmp.lt.s32.totalorder %s550_s12, %s550_s12 }
  0x14   :  { %p557_p8 = por %p556_p7, %p555_p6 }
  0x16   :  { %p558_p9 = pnand %p557_p8, %p551_p5 }
  0x18   :  { %561 = shalt.err (!%p558_p9)
}
  0x19   :  { %25 = dma.hbm_to_vmem [thread:$0]  %s754_s0, 128, %s23_s9, [#allocation3]  }
  0x1a   :  { %s570_s15 = scalar_lea.vmem %s46_s11, 2048  ;;  %p575_p11 = scmp.lt.s32.totalorder %s46_s11, %s46_s11 }
  0x1b   :  { %p571_p10 = scmp.ne.s32.totalorder %s46_s11, %s570_s15  ;;  %p576_p12 = scmp.lt.s32.totalorder %s570_s15, %s570_s15 }
  0x1d   :  { %p577_p13 = por %p576_p12, %p575_p11 }
  0x1f   :  { %p578_p0 = pnand %p577_p13, %p571_p10 }
  0x21   :  { %581 = shalt.err (!%p578_p0)
}
  0x22   :  { %51 = dma.hbm_to_vmem [thread:$0]  %s757_s3, 2048, %s46_s11, [#allocation6], %s631_s27, %s631_s27, %s632_s28  }
  0x23   :  { %s635_s17 = smov [#allocation8]  }
  0x24   :  { %s59_s18 = sshll.u32 %s635_s17, 4  ;;  %s60_s18 = int_to_ptr.vmem [resolvable:$true] %s59_s18 }
  0x25   :  { %s590_s19 = scalar_lea.vmem %s60_s18, 2048  ;;  %p595_p2 = scmp.lt.s32.totalorder %s60_s18, %s60_s18 }
  0x26   :  { %p591_p1 = scmp.ne.s32.totalorder %s60_s18, %s590_s19  ;;  %p596_p3 = scmp.lt.s32.totalorder %s590_s19, %s590_s19 }
  0x28   :  { %p597_p4 = por %p596_p3, %p595_p2 }
  0x2a   :  { %p598_p5 = pnand %p597_p4, %p591_p1 }
  0x2c   :  { %601 = shalt.err (!%p598_p5)
}
  0x2d   :  { %65 = dma.hbm_to_vmem [thread:$0]  %s759_s5, 2048, %s60_s18, [#allocation9], %s631_s27, %s631_s27, %s632_s28  }
  0x2e   :  { %622 = dma.done.wait [#allocation3], 128  }
  0x2f   :  { %623 = vsyncadd [#allocation3], 4294967168 }
  0x30   :  { %624 = dma.done.wait [#allocation6], 2560  }
  0x31   :  { %625 = vsyncadd [#allocation6], 4294964736 }
  0x32   :  { %626 = dma.done.wait [#allocation9], 2048  }
  0x33   :  { %627 = vsyncadd [#allocation9], 4294965248  ;;  %v636_v0 = vmov 0.0   ;;  %vm637_vm0 = vmmov 0   ;;  %v84_v1 = vld [vmem:[#allocation5 + $0x18] sm:$0xff]  ;;  %v83_v2 = vld [vmem:[#allocation5 + $0x10] sm:$0xff]  ;;  %v354_v48 = vlaneseq }
  0x34   :  { %428 = vmatprep.subr.mxu0 %v636_v0  ;;  %436 = vmatprep.mubr.msk.f32.mxu0 %vm637_vm0, %v636_v0  ;;  %v182_v3 = vld [vmem:[#allocation7 + $0x78] sm:$0xff]  ;;  %v82_v4 = vld [vmem:[#allocation5 + $0x8] sm:$0xff]  ;;  %v181_v5 = vld [vmem:[#allocation7 + $0x70] sm:$0xff]  ;;  %vm92_vm1 = vcmask 261120  }
  0x35   :  { %439 = vmatprep.subr.mxu1 %v636_v0  ;;  %471 = vmatprep.mubr.msk.f32.mxu1 %vm637_vm0, %v636_v0  ;;  %v180_v6 = vld [vmem:[#allocation7 + $0x68] sm:$0xff]  ;;  %v81_v7 = vld [vmem:[#allocation5] sm:$0xff]  ;;  %v80_v8 = vld [vmem:[#allocation2] sm:$0xff]  ;;  %v355_v49 = vand.u32 127, %v354_v48 }
  0x36   :  { %429 = vmatpush3.msra.mxu0 %v84_v1  ;;  %440 = vmatpush3.msra.mxu1 %v182_v3  ;;  %v179_v9 = vld [vmem:[#allocation7 + $0x60] sm:$0xff]  ;;  %v178_v10 = vld [vmem:[#allocation7 + $0x58] sm:$0xff]  ;;  %v177_v11 = vld [vmem:[#allocation7 + $0x50] sm:$0xff] }
  0x37   :  { %430 = vmatprep.subr.mxu0 %v636_v0  ;;  %441 = vmatprep.subr.mxu1 %v636_v0  ;;  %v176_v12 = vld [vmem:[#allocation7 + $0x48] sm:$0xff]  ;;  %v175_v13 = vld [vmem:[#allocation7 + $0x40] sm:$0xff]  ;;  %v174_v14 = vld [vmem:[#allocation7 + $0x38] sm:$0xff]  ;;  %vm356_vm2 = vcmp.lt.s32.totalorder %v355_v49, 10 }
  0x38   :  { %431 = vmatpush3.msra.mxu0 %v83_v2  ;;  %442 = vmatpush3.msra.mxu1 %v181_v5  ;;  %v173_v15 = vld [vmem:[#allocation7 + $0x30] sm:$0xff]  ;;  %v172_v16 = vld [vmem:[#allocation7 + $0x28] sm:$0xff]  ;;  %v171_v17 = vld [vmem:[#allocation7 + $0x20] sm:$0xff] }
  0x39   :  { %432 = vmatprep.subr.mxu0 %v636_v0  ;;  %443 = vmatprep.subr.mxu1 %v636_v0  ;;  %v170_v18 = vld [vmem:[#allocation7 + $0x18] sm:$0xff]  ;;  %v169_v19 = vld [vmem:[#allocation7 + $0x10] sm:$0xff]  ;;  %v168_v20 = vld [vmem:[#allocation7 + $0x8] sm:$0xff] }
  0x3a   :  { %433 = vmatpush3.msra.mxu0 %v82_v4  ;;  %444 = vmatpush3.msra.mxu1 %v180_v6  ;;  %v167_v21 = vld [vmem:[#allocation7] sm:$0xff]  ;;  %v276_v22 = vld [vmem:[#allocation8 + $0x78] sm:$0xff]  ;;  %v275_v23 = vld [vmem:[#allocation8 + $0x70] sm:$0xff] }
  0x3b   :  { %434 = vmatprep.subr.mxu0 %v636_v0  ;;  %445 = vmatprep.subr.mxu1 %v636_v0  ;;  %v274_v24 = vld [vmem:[#allocation8 + $0x68] sm:$0xff]  ;;  %v273_v25 = vld [vmem:[#allocation8 + $0x60] sm:$0xff]  ;;  %v272_v26 = vld [vmem:[#allocation8 + $0x58] sm:$0xff] }
  0x3c   :  { %435 = vmatpush3.msra.mxu0 %v81_v7  ;;  %446 = vmatpush3.msra.mxu1 %v179_v9  ;;  %v271_v27 = vld [vmem:[#allocation8 + $0x50] sm:$0xff]  ;;  %v270_v28 = vld [vmem:[#allocation8 + $0x48] sm:$0xff]  ;;  %v269_v29 = vld [vmem:[#allocation8 + $0x40] sm:$0xff] }
  0x3d   :  { %437 = vmatmul.mubr.msk.f32.vlgmr.msra.gmra.mxu0 %vm92_vm1, %v80_v8  ;;  %447 = vmatprep.subr.mxu1 %v636_v0  ;;  %v268_v30 = vld [vmem:[#allocation8 + $0x38] sm:$0xff]  ;;  %v267_v31 = vld [vmem:[#allocation8 + $0x30] sm:$0xff]  ;;  %v266_v32 = vld [vmem:[#allocation8 + $0x28] sm:$0xff] }
  0x3e   :  { %474 = vmatprep.subr.mxu0 %v636_v0  ;;  %448 = vmatpush3.msra.mxu1 %v178_v10  ;;  %v265_v33 = vld [vmem:[#allocation8 + $0x20] sm:$0xff]  ;;  %v264_v34 = vld [vmem:[#allocation8 + $0x18] sm:$0xff]  ;;  %v263_v40 = vld [vmem:[#allocation8 + $0x10] sm:$0xff] }
  0x3f   :  { %506 = vmatprep.mubr.msk.f32.mxu0 %vm637_vm0, %v636_v0  ;;  %449 = vmatprep.subr.mxu1 %v636_v0  ;;  %v385_v35 = vld [vmem:[%s756_s2] ss:$0 sm:$0xff]  ;;  %v262_v41 = vld [vmem:[#allocation8 + $0x8] sm:$0xff]  ;;  %v261_v42 = vld [vmem:[#allocation8] sm:$0xff] }
  0x40   :  { %450 = vmatpush3.msra.mxu1 %v177_v11  ;;  %475 = vmatpush3.msra.mxu0 %v276_v22  ;;  %v387_v43 = vld [vmem:[%s758_s4] ss:$0 sm:$0xff]  ;;  %s638_s4 = smov [#allocation10]  }
  0x41   :  { %451 = vmatprep.subr.mxu1 %v636_v0  ;;  %476 = vmatprep.subr.mxu0 %v636_v0  ;;  %v388_v50 = vld [vmem:[%s760_s6] ss:$0 sm:$0xff]  ;;  %s374_s24 = sshll.u32 %s638_s4, 4  ;;  %s375_s24 = int_to_ptr.vmem [resolvable:$true] %s374_s24 }
  0x42   :  { %452 = vmatpush3.msra.mxu1 %v176_v12  ;;  %477 = vmatpush3.msra.mxu0 %v275_v23  ;;  %s602_s6 = scalar_lea.vmem %s375_s24, 128  ;;  %p607_p7 = scmp.lt.s32.totalorder %s375_s24, %s375_s24 }
  0x43   :  { %453 = vmatprep.subr.mxu1 %v636_v0  ;;  %478 = vmatprep.subr.mxu0 %v636_v0  ;;  %p603_p6 = scmp.ne.s32.totalorder %s375_s24, %s602_s6  ;;  %p608_p8 = scmp.lt.s32.totalorder %s602_s6, %s602_s6 }
  0x44   :  { %454 = vmatpush3.msra.mxu1 %v175_v13  ;;  %479 = vmatpush3.msra.mxu0 %v274_v24 }
  0x45   :  { %455 = vmatprep.subr.mxu1 %v636_v0  ;;  %480 = vmatprep.subr.mxu0 %v636_v0  ;;  %p609_p9 = por %p608_p8, %p607_p7 }
  0x46   :  { %456 = vmatpush3.msra.mxu1 %v174_v14  ;;  %481 = vmatpush3.msra.mxu0 %v273_v25 }
  0x47   :  { %457 = vmatprep.subr.mxu1 %v636_v0  ;;  %482 = vmatprep.subr.mxu0 %v636_v0  ;;  %p610_p10 = pnand %p609_p9, %p603_p6 }
  0x48   :  { %458 = vmatpush3.msra.mxu1 %v173_v15  ;;  %483 = vmatpush3.msra.mxu0 %v272_v26 }
  0x49   :  { %459 = vmatprep.subr.mxu1 %v636_v0  ;;  %484 = vmatprep.subr.mxu0 %v636_v0 }
  0x4a   :  { %460 = vmatpush3.msra.mxu1 %v172_v16  ;;  %485 = vmatpush3.msra.mxu0 %v271_v27 }
  0x4b   :  { %461 = vmatprep.subr.mxu1 %v636_v0  ;;  %486 = vmatprep.subr.mxu0 %v636_v0 }
  0x4c   :  { %462 = vmatpush3.msra.mxu1 %v171_v17  ;;  %487 = vmatpush3.msra.mxu0 %v270_v28 }
  0x4d   :  { %463 = vmatprep.subr.mxu1 %v636_v0  ;;  %488 = vmatprep.subr.mxu0 %v636_v0 }
  0x4e   :  { %464 = vmatpush3.msra.mxu1 %v170_v18  ;;  %489 = vmatpush3.msra.mxu0 %v269_v29 }
  0x4f   :  { %465 = vmatprep.subr.mxu1 %v636_v0  ;;  %490 = vmatprep.subr.mxu0 %v636_v0 }
  0x50   :  { %466 = vmatpush3.msra.mxu1 %v169_v19  ;;  %491 = vmatpush3.msra.mxu0 %v268_v30 }
  0x51   :  { %467 = vmatprep.subr.mxu1 %v636_v0  ;;  %492 = vmatprep.subr.mxu0 %v636_v0 }
  0x52   :  { %468 = vmatpush3.msra.mxu1 %v168_v20  ;;  %493 = vmatpush3.msra.mxu0 %v267_v31 }
  0x53   :  { %469 = vmatprep.subr.mxu1 %v636_v0  ;;  %494 = vmatprep.subr.mxu0 %v636_v0 }
  0x54   :  { %470 = vmatpush3.msra.mxu1 %v167_v21  ;;  %495 = vmatpush3.msra.mxu0 %v266_v32 }
  0x55   :  { %496 = vmatprep.subr.mxu0 %v636_v0 }
  0x56   :  { %497 = vmatpush3.msra.mxu0 %v265_v33 }
  0x57   :  { %498 = vmatprep.subr.mxu0 %v636_v0 }
  0x58   :  { %499 = vmatpush3.msra.mxu0 %v264_v34 }
  0x59   :  { %500 = vmatprep.subr.mxu0 %v636_v0 }
  0x5a   :  { %501 = vmatpush3.msra.mxu0 %v263_v40 }
  0x5b   :  { %502 = vmatprep.subr.mxu0 %v636_v0 }
  0x5c   :  { %503 = vmatpush3.msra.mxu0 %v262_v41 }
  0x5d   :  { %504 = vmatprep.subr.mxu0 %v636_v0 }
  0x5e   :  { %505 = vmatpush3.msra.mxu0 %v261_v42 }
  0xfd   :  { %v162_v36 = vpop.f32.mrf.mxu0 }
  0xfe   :  { %v163_v37 = vadd.f32 %v385_v35, %v162_v36 }
  0xff   :  { %v438_v38 = vpop.f32.mrf.mxu0 }
 0x100   :  { %v166_v39 = vmax.f32 %v163_v37, 0.0 }
 0x102   :  { %472 = vmatmul.mubr.f32.vlgmr.msra.gmra.mxu1 %v166_v39 }
 0x1c2   :  { %v256_v44 = vpop.f32.mrf.mxu1 }
 0x1c3   :  { %v257_v45 = vadd.f32 %v387_v43, %v256_v44 }
 0x1c4   :  { %v473_v46 = vpop.f32.mrf.mxu1 }
 0x1c5   :  { %v260_v47 = vmax.f32 %v257_v45, 0.0 }
 0x1c7   :  { %507 = vmatmul.mubr.f32.vlgmr.msra.gmra.mxu0 %v260_v47 }
 0x287   :  { %v350_v51 = vpop.f32.mrf.mxu0 }
 0x288   :  { %v351_v52 = vadd.f32 %v388_v50, %v350_v51 }
 0x289   :  { %v508_v53 = vpop.f32.mrf.mxu0 }
 0x28a   :  { %v357_v54 = vsel %vm356_vm2, %v351_v52, -inf }
 0x28b   :  { %358 = vmax.xlane.f32.xlu0 %v357_v54 }
 0x314   :  { %v359_v55 = vpop.xlane.xlu0 %358 }
 0x315   :  { %v360_v56 = vsub.f32 %v357_v54, %v359_v55 }
 0x317   :  { %v361_v57 = vmul.f32 1.442695, %v360_v56 }
 0x319   :  { %518 = vpow2.f32 %v361_v57 }
 0x326   :  { %v519_v58 = vpop.eup %518 }
 0x327   :  { %363 = vadd.xlane.f32.xlu0 %v519_v58 }
 0x3b0   :  { %v364_v59 = vpop.xlane.xlu0 %363 }
 0x3b1   :  { %520 = vrcp.f32 %v364_v59 }
 0x3be   :  { %v521_v60 = vpop.eup %520 }
 0x3bf   :  { %v366_v61 = vmul.f32 %v521_v60, %v519_v58 }
 0x3c1   :  { %367 = vst [vmem:[#allocation10] sm:$0xff] %v366_v61 }
 0x3c2   :  { %613 = shalt.err (!%p610_p10)
}
 0x3c3   :  { %377 = dma.vmem_to_hbm [thread:$0]  %s375_s24, 128, %s761_s7, [#allocation4]  }
 0x3c4   :  { %628 = dma.done.wait [#allocation4], 128  }
 0x3c5   :  { %629 = vsyncadd [#allocation4], 4294967168 }
 0x3c6   :  { %381 = vsyncpa [#allocation3], 1 }
 0x3c7   :  { %382 = vsyncpa [#allocation6], 1 }
 0x3c8   :  { %383 = vsyncpa [#allocation9], 1 }
 0x3c9   :  { %384 = vsyncpa [#allocation4], 1 }

</bundles_post_ra>
